<compile_context>
chip_gen: v5e
topology: v5e:2x2
jax: 0.10.0
libtpu: 0.0.40
codegen_flags: <defaults>
</compile_context>

<pallas_src>
import jax
import jax.numpy as jnp
from jax.experimental import pallas as pl
from jax.experimental.pallas import tpu as pltpu

STATE_DIM = 44
ACTION_DIM = 2
HIDDEN_DIM = 128
OUT_DIM = 2
W3_PAD = 128             # fc_out weight padded to 128 cols in VMEM only (resident)
DEFAULT_TILE_B = 2048    # batch tile (multiple of 8); large enough to amortize
_MIN_SPLIT_BATCH = 2048  # below this, a single grid block is fine even on v7x

_HIGHEST = jax.lax.Precision.HIGHEST


def _cdiv(a, b):
    return -(-a // b)


def _round_up(n, m):
    return _cdiv(n, m) * m


def _choose_tile_b(B, tile_b):
    tile_b = max(8, min(tile_b, _round_up(B, 8)))
    # Prefer >= 2 grid blocks when the batch is large enough to be worth
    # splitting (v7x has 2 TensorCores fed from the single "parallel" axis).
    if B >= _MIN_SPLIT_BATCH and _cdiv(B, tile_b) < 2:
        tile_b = _round_up(_cdiv(B, 2), 8)
    return tile_b


def _qnet_kernel(x_ref, a_ref, w1x_ref, w1a_ref, b1_ref,
                 w2_ref, b2_ref, w3_ref, b3_ref, out_ref):
    # fc1: MXU matmul for the 44-wide state part; the 2-wide action part is
    # cheaper as VPU broadcast-FMAs than a K=2 MXU pass.
    h1 = jnp.dot(x_ref[...], w1x_ref[...],
                 preferred_element_type=jnp.float32, precision=_HIGHEST)
    a = a_ref[...]
    for j in range(ACTION_DIM):                      # static unroll (2 FMAs)
        h1 = h1 + a[:, j:j + 1] * w1a_ref[j:j + 1, :]
    h1 = jnp.maximum(h1 + b1_ref[...], 0.0)

    # fc2
    h2 = jnp.dot(h1, w2_ref[...],
                 preferred_element_type=jnp.float32, precision=_HIGHEST)
    h2 = jnp.maximum(h2 + b2_ref[...], 0.0)

    # fc_out: 128-wide matmul in VMEM (padded resident weight), but only the
    # OUT_DIM real columns are stored to the (tile_b, OUT_DIM) output block.
    out = jnp.dot(h2, w3_ref[...],
                  preferred_element_type=jnp.float32, precision=_HIGHEST)
    out = out + b3_ref[...]
    out_ref[...] = out[:, :OUT_DIM].astype(out_ref.dtype)


def prepare_params(params):
    """One-time conversion of (w1,b1,w2,b2,w3,b3) into kernel-ready form."""
    w1, b1, w2, b2, w3, b3 = params
    w1x = w1[:STATE_DIM, :].astype(jnp.float32)            # (44, 128)
    w1a = w1[STATE_DIM:, :].astype(jnp.float32)             # (2, 128)
    b1f = jnp.reshape(b1, (1, HIDDEN_DIM)).astype(jnp.float32)
    w2f = w2.astype(jnp.float32)                             # (128, 128)
    b2f = jnp.reshape(b2, (1, HIDDEN_DIM)).astype(jnp.float32)
    # fc_out padded to 128 columns for a clean MXU shape; padding lives only in
    # VMEM-resident weights (read once per call), never in the HBM output.
    w3p = jnp.zeros((HIDDEN_DIM, W3_PAD), jnp.float32)
    w3p = w3p.at[:, :OUT_DIM].set(w3.astype(jnp.float32))
    b3p = jnp.zeros((1, W3_PAD), jnp.float32)
    b3p = b3p.at[:, :OUT_DIM].set(jnp.reshape(b3, (1, OUT_DIM)).astype(jnp.float32))
    return (w1x, w1a, b1f, w2f, b2f, w3p, b3p)


def qvalue_net_forward(x, a, prepared, tile_b=DEFAULT_TILE_B):
    """x: (B, 44) f32, a: (B, 2) f32, prepared = prepare_params(...) -> (B, 2) f32."""
    w1x, w1a, b1f, w2f, b2f, w3p, b3p = prepared
    B = x.shape[0]

    tile_b = _choose_tile_b(B, tile_b)
    grid = (_cdiv(B, tile_b),)           # ragged last block handled by Pallas

    batch_spec = lambda feat: pl.BlockSpec((tile_b, feat), lambda i: (i, 0))
    const_spec = lambda shape: pl.BlockSpec(shape, lambda i: (0, 0))

    flops = 2 * B * (STATE_DIM * HIDDEN_DIM
                     + ACTION_DIM * HIDDEN_DIM
                     + HIDDEN_DIM * HIDDEN_DIM
                     + HIDDEN_DIM * W3_PAD)
    weight_bytes = 4 * (w1x.size + w1a.size + b1f.size
                        + w2f.size + b2f.size + w3p.size + b3p.size)
    bytes_accessed = (B * (STATE_DIM + ACTION_DIM) * 4   # x, a in
                      + B * OUT_DIM * 4                  # out
                      + weight_bytes)

    out = pl.pallas_call(
        _qnet_kernel,
        out_shape=jax.ShapeDtypeStruct((B, OUT_DIM), jnp.float32),
        grid=grid,
        in_specs=[
            batch_spec(STATE_DIM),                 # x   (tile_b, 44)
            batch_spec(ACTION_DIM),                # a   (tile_b, 2)
            const_spec((STATE_DIM, HIDDEN_DIM)),   # w1x (44, 128)
            const_spec((ACTION_DIM, HIDDEN_DIM)),  # w1a (2, 128)
            const_spec((1, HIDDEN_DIM)),           # b1  (1, 128)
            const_spec((HIDDEN_DIM, HIDDEN_DIM)),  # w2  (128, 128)
            const_spec((1, HIDDEN_DIM)),           # b2  (1, 128)
            const_spec((HIDDEN_DIM, W3_PAD)),      # w3  (128, 128) padded
            const_spec((1, W3_PAD)),               # b3  (1, 128)  padded
        ],
        out_specs=batch_spec(OUT_DIM),             # out (tile_b, 2) — narrow store
        compiler_params=pltpu.CompilerParams(
            dimension_semantics=("parallel",),
        ),
        cost_estimate=pl.CostEstimate(
            flops=flops, transcendentals=0, bytes_accessed=bytes_accessed),
    )(x, a, w1x, w1a, b1f, w2f, b2f, w3p, b3p)

    return out


def init_params(key):
    """PyTorch nn.Linear default init: U(-1/sqrt(fan_in), +1/sqrt(fan_in))."""
    ks = jax.random.split(key, 6)

    def linear(kw, kb, fan_in, fan_out):
        bound = 1.0 / jnp.sqrt(jnp.float32(fan_in))
        w = jax.random.uniform(kw, (fan_in, fan_out), jnp.float32, -bound, bound)
        b = jax.random.uniform(kb, (1, fan_out), jnp.float32, -bound, bound)
        return w, b

    w1, b1 = linear(ks[0], ks[1], STATE_DIM + ACTION_DIM, HIDDEN_DIM)
    w2, b2 = linear(ks[2], ks[3], HIDDEN_DIM, HIDDEN_DIM)
    w3, b3 = linear(ks[4], ks[5], HIDDEN_DIM, OUT_DIM)
    return (w1, b1, w2, b2, w3, b3)


def _reference_forward(x, a, params):
    w1, b1, w2, b2, w3, b3 = params
    cat = jnp.concatenate([x, a], axis=1)
    h1 = jnp.maximum(jnp.dot(cat, w1, precision=_HIGHEST) + b1, 0.0)
    h2 = jnp.maximum(jnp.dot(h1, w2, precision=_HIGHEST) + b2, 0.0)
    return jnp.dot(h2, w3, precision=_HIGHEST) + b3


if __name__ == "__main__":
    key = jax.random.PRNGKey(0)
    k_params, k_x, k_a = jax.random.split(key, 3)

    params = init_params(k_params)
    prepared = prepare_params(params)          # hoisted weight prep, done once

    # Exercise both an exact-tile batch and a ragged (non multiple-of-8) batch.
    for batch in (8, 20):
        kx, ka = jax.random.fold_in(k_x, batch), jax.random.fold_in(k_a, batch)
        x = jax.random.normal(kx, (batch, STATE_DIM), jnp.float32)
        a = jax.random.normal(ka, (batch, ACTION_DIM), jnp.float32)

        out = qvalue_net_forward(x, a, prepared)
        out = jax.block_until_ready(out)

        ref = _reference_forward(x, a, params)
        assert out.shape == (batch, OUT_DIM)
        assert jnp.allclose(out, ref, atol=1e-3, rtol=1e-3), \
            f"mismatch vs JAX reference at batch={batch}"

    print("KERNEL_OK")
</pallas_src>

<mosaic_0001>
module attributes {stable_mosaic.version = 11 : i64} {
  func.func @_qnet_kernel(%arg0: i32, %arg1: memref<8x44xf32, #tpu.memory_space<vmem>>, %arg2: memref<8x2xf32, #tpu.memory_space<vmem>>, %arg3: memref<44x128xf32, #tpu.memory_space<vmem>>, %arg4: memref<2x128xf32, #tpu.memory_space<vmem>>, %arg5: memref<1x128xf32, #tpu.memory_space<vmem>>, %arg6: memref<128x128xf32, #tpu.memory_space<vmem>>, %arg7: memref<1x128xf32, #tpu.memory_space<vmem>>, %arg8: memref<128x128xf32, #tpu.memory_space<vmem>>, %arg9: memref<1x128xf32, #tpu.memory_space<vmem>>, %arg10: memref<8x2xf32, #tpu.memory_space<vmem>>) attributes {dimension_semantics = [#tpu.dimension_semantics<parallel>], iteration_bounds = array<i64: 1>, scalar_prefetch = 0 : i64, scratch_operands = 0 : i64, tpu.core_type = #tpu.core_type<tc>, window_params = [{transform_indices = @transform_0, window_bounds = array<i64: 8, 44>}, {transform_indices = @transform_1, window_bounds = array<i64: 8, 2>}, {pipeline_mode = #tpu.pipeline_mode<synchronous>, transform_indices = @transform_2, window_bounds = array<i64: 44, 128>}, {pipeline_mode = #tpu.pipeline_mode<synchronous>, transform_indices = @transform_3, window_bounds = array<i64: 2, 128>}, {pipeline_mode = #tpu.pipeline_mode<synchronous>, transform_indices = @transform_4, window_bounds = array<i64: 1, 128>}, {pipeline_mode = #tpu.pipeline_mode<synchronous>, transform_indices = @transform_5, window_bounds = array<i64: 128, 128>}, {pipeline_mode = #tpu.pipeline_mode<synchronous>, transform_indices = @transform_6, window_bounds = array<i64: 1, 128>}, {pipeline_mode = #tpu.pipeline_mode<synchronous>, transform_indices = @transform_7, window_bounds = array<i64: 128, 128>}, {pipeline_mode = #tpu.pipeline_mode<synchronous>, transform_indices = @transform_8, window_bounds = array<i64: 1, 128>}, {transform_indices = @transform_9, window_bounds = array<i64: 8, 2>}]} {
    %c0 = arith.constant 0 : index
    %c0_0 = arith.constant 0 : index
    %0 = vector.load %arg1[%c0, %c0_0] : memref<8x44xf32, #tpu.memory_space<vmem>>, vector<8x44xf32>
    %c0_1 = arith.constant 0 : index
    %c0_2 = arith.constant 0 : index
    %1 = vector.load %arg3[%c0_1, %c0_2] : memref<44x128xf32, #tpu.memory_space<vmem>>, vector<44x128xf32>
    %cst = arith.constant dense<0.000000e+00> : vector<8x128xf32>
    %2 = tpu.matmul %0, %1, %cst {dimension_numbers = #tpu.dot_dimension_numbers<[1], [0], [0], [1], [0, 0, 1, 1], [], []>, precision = #tpu.contract_precision<fp32>} : vector<8x44xf32>, vector<44x128xf32>, vector<8x128xf32> -> vector<8x128xf32>
    %c0_3 = arith.constant 0 : index
    %c0_4 = arith.constant 0 : index
    %3 = vector.load %arg2[%c0_3, %c0_4] : memref<8x2xf32, #tpu.memory_space<vmem>>, vector<8x2xf32>
    %4 = vector.extract_strided_slice %3 {offsets = [0, 0], sizes = [8, 1], strides = [1, 1]} : vector<8x2xf32> to vector<8x1xf32>
    %c0_5 = arith.constant 0 : index
    %c0_6 = arith.constant 0 : index
    %5 = vector.load %arg4[%c0_5, %c0_6] : memref<2x128xf32, #tpu.memory_space<vmem>>, vector<1x128xf32>
    %6 = vector.broadcast %4 : vector<8x1xf32> to vector<8x128xf32>
    %7 = vector.broadcast %5 : vector<1x128xf32> to vector<8x128xf32>
    %8 = arith.mulf %6, %7 : vector<8x128xf32>
    %9 = arith.addf %2, %8 : vector<8x128xf32>
    %10 = vector.extract_strided_slice %3 {offsets = [0, 1], sizes = [8, 1], strides = [1, 1]} : vector<8x2xf32> to vector<8x1xf32>
    %c1 = arith.constant 1 : index
    %c0_7 = arith.constant 0 : index
    %11 = vector.load %arg4[%c1, %c0_7] : memref<2x128xf32, #tpu.memory_space<vmem>>, vector<1x128xf32>
    %12 = vector.broadcast %10 : vector<8x1xf32> to vector<8x128xf32>
    %13 = vector.broadcast %11 : vector<1x128xf32> to vector<8x128xf32>
    %14 = arith.mulf %12, %13 : vector<8x128xf32>
    %15 = arith.addf %9, %14 : vector<8x128xf32>
    %c0_8 = arith.constant 0 : index
    %c0_9 = arith.constant 0 : index
    %16 = vector.load %arg5[%c0_8, %c0_9] : memref<1x128xf32, #tpu.memory_space<vmem>>, vector<1x128xf32>
    %17 = vector.broadcast %16 : vector<1x128xf32> to vector<8x128xf32>
    %18 = arith.addf %15, %17 : vector<8x128xf32>
    %cst_10 = arith.constant 0.000000e+00 : f32
    %19 = vector.broadcast %cst_10 : f32 to vector<8x128xf32>
    %20 = arith.maximumf %18, %19 : vector<8x128xf32>
    %c0_11 = arith.constant 0 : index
    %c0_12 = arith.constant 0 : index
    %21 = vector.load %arg6[%c0_11, %c0_12] : memref<128x128xf32, #tpu.memory_space<vmem>>, vector<128x128xf32>
    %cst_13 = arith.constant dense<0.000000e+00> : vector<8x128xf32>
    %22 = tpu.matmul %20, %21, %cst_13 {dimension_numbers = #tpu.dot_dimension_numbers<[1], [0], [0], [1], [0, 0, 1, 1], [], []>, precision = #tpu.contract_precision<fp32>} : vector<8x128xf32>, vector<128x128xf32>, vector<8x128xf32> -> vector<8x128xf32>
    %c0_14 = arith.constant 0 : index
    %c0_15 = arith.constant 0 : index
    %23 = vector.load %arg7[%c0_14, %c0_15] : memref<1x128xf32, #tpu.memory_space<vmem>>, vector<1x128xf32>
    %24 = vector.broadcast %23 : vector<1x128xf32> to vector<8x128xf32>
    %25 = arith.addf %22, %24 : vector<8x128xf32>
    %cst_16 = arith.constant 0.000000e+00 : f32
    %26 = vector.broadcast %cst_16 : f32 to vector<8x128xf32>
    %27 = arith.maximumf %25, %26 : vector<8x128xf32>
    %c0_17 = arith.constant 0 : index
    %c0_18 = arith.constant 0 : index
    %28 = vector.load %arg8[%c0_17, %c0_18] : memref<128x128xf32, #tpu.memory_space<vmem>>, vector<128x128xf32>
    %cst_19 = arith.constant dense<0.000000e+00> : vector<8x128xf32>
    %29 = tpu.matmul %27, %28, %cst_19 {dimension_numbers = #tpu.dot_dimension_numbers<[1], [0], [0], [1], [0, 0, 1, 1], [], []>, precision = #tpu.contract_precision<fp32>} : vector<8x128xf32>, vector<128x128xf32>, vector<8x128xf32> -> vector<8x128xf32>
    %c0_20 = arith.constant 0 : index
    %c0_21 = arith.constant 0 : index
    %30 = vector.load %arg9[%c0_20, %c0_21] : memref<1x128xf32, #tpu.memory_space<vmem>>, vector<1x128xf32>
    %31 = vector.broadcast %30 : vector<1x128xf32> to vector<8x128xf32>
    %32 = arith.addf %29, %31 : vector<8x128xf32>
    %33 = vector.extract_strided_slice %32 {offsets = [0, 0], sizes = [8, 2], strides = [1, 1]} : vector<8x128xf32> to vector<8x2xf32>
    %c0_22 = arith.constant 0 : index
    %c0_23 = arith.constant 0 : index
    %34 = vector.load %arg10[%c0_22, %c0_23] : memref<8x2xf32, #tpu.memory_space<vmem>>, vector<8x2xf32>
    tpu.vector_store %arg10[%c0_22, %c0_23], %33 {strides = array<i32>} : memref<8x2xf32, #tpu.memory_space<vmem>>, vector<8x2xf32>,
    return
  }
  func.func @transform_0(%arg0: i32) -> (i32, i32) {
    %c0_i32 = arith.constant 0 : i32
    %c0_i32_0 = arith.constant 0 : i32
    return %arg0, %c0_i32 : i32, i32
  }
  func.func @transform_1(%arg0: i32) -> (i32, i32) {
    %c0_i32 = arith.constant 0 : i32
    %c0_i32_0 = arith.constant 0 : i32
    return %arg0, %c0_i32 : i32, i32
  }
  func.func @transform_2(%arg0: i32) -> (i32, i32) {
    %c0_i32 = arith.constant 0 : i32
    %c0_i32_0 = arith.constant 0 : i32
    %c0_i32_1 = arith.constant 0 : i32
    return %c0_i32, %c0_i32_0 : i32, i32
  }
  func.func @transform_3(%arg0: i32) -> (i32, i32) {
    %c0_i32 = arith.constant 0 : i32
    %c0_i32_0 = arith.constant 0 : i32
    %c0_i32_1 = arith.constant 0 : i32
    return %c0_i32, %c0_i32_0 : i32, i32
  }
  func.func @transform_4(%arg0: i32) -> (i32, i32) {
    %c0_i32 = arith.constant 0 : i32
    %c0_i32_0 = arith.constant 0 : i32
    %c0_i32_1 = arith.constant 0 : i32
    return %c0_i32, %c0_i32_0 : i32, i32
  }
  func.func @transform_5(%arg0: i32) -> (i32, i32) {
    %c0_i32 = arith.constant 0 : i32
    %c0_i32_0 = arith.constant 0 : i32
    %c0_i32_1 = arith.constant 0 : i32
    return %c0_i32, %c0_i32_0 : i32, i32
  }
  func.func @transform_6(%arg0: i32) -> (i32, i32) {
    %c0_i32 = arith.constant 0 : i32
    %c0_i32_0 = arith.constant 0 : i32
    %c0_i32_1 = arith.constant 0 : i32
    return %c0_i32, %c0_i32_0 : i32, i32
  }
  func.func @transform_7(%arg0: i32) -> (i32, i32) {
    %c0_i32 = arith.constant 0 : i32
    %c0_i32_0 = arith.constant 0 : i32
    %c0_i32_1 = arith.constant 0 : i32
    return %c0_i32, %c0_i32_0 : i32, i32
  }
  func.func @transform_8(%arg0: i32) -> (i32, i32) {
    %c0_i32 = arith.constant 0 : i32
    %c0_i32_0 = arith.constant 0 : i32
    %c0_i32_1 = arith.constant 0 : i32
    return %c0_i32, %c0_i32_0 : i32, i32
  }
  func.func @transform_9(%arg0: i32) -> (i32, i32) {
    %c0_i32 = arith.constant 0 : i32
    %c0_i32_0 = arith.constant 0 : i32
    return %arg0, %c0_i32 : i32, i32
  }
}

</mosaic_0001>

<bundles_post_ra>
// kernel: tpu_custom_call.1
= control target key start
LH: loop header
LB: loop body
LE: loop exit
PB: predicated region body
PF: predicated region fallthrough
CT: control target
= control target key end

     0   :  { %14 = vsyncpa [#allocation3], 0  ;;  %s1780_s0 = inlined_call_operand.vmem [shape: f32[8,44], index: 0, kind: input, shape index: {}]   ;;  %s1781_s1 = inlined_call_operand.vmem [shape: f32[8,2], index: 1, kind: input, shape index: {}]   ;;  %s1782_s2 = inlined_call_operand.hbm [shape: f32[44,128], index: 2, kind: input, shape index: {}]   ;;  %s1783_s3 = inlined_call_operand.vmem [shape: f32[2,128], index: 3, kind: input, shape index: {}]   ;;  %s1784_s4 = inlined_call_operand.vmem [shape: f32[1,128], index: 4, kind: input, shape index: {}]   ;;  %s1785_s5 = inlined_call_operand.hbm [shape: f32[128,128], index: 5, kind: input, shape index: {}]   ;;  %s1786_s6 = inlined_call_operand.vmem [shape: f32[1,128], index: 6, kind: input, shape index: {}]   ;;  %s1787_s7 = inlined_call_operand.hbm [shape: f32[128,128], index: 7, kind: input, shape index: {}]   ;;  %s1788_s8 = inlined_call_operand.vmem [shape: f32[1,128], index: 8, kind: input, shape index: {}]   ;;  %s1789_s9 = inlined_call_operand.vmem [shape: f32[8,2], index: 9, kind: output, shape index: {}]  }
   0x1   :  { %15 = vsyncpa [#allocation5], 0  ;;  %s41_s11 = sshll.u32 %s1785_s5, 4  ;;  %s1149_s12 = smov [#allocation4]   ;;  %s42_s11 = int_to_ptr.hbm [resolvable:$true] %s41_s11 }
   0x2   :  { %s43_s13 = sshll.u32 %s1149_s12, 4  ;;  %s24_s16 = sshll.u32 %s1782_s2, 4  ;;  %s44_s13 = int_to_ptr.vmem [resolvable:$true] %s43_s13  ;;  %s25_s16 = int_to_ptr.hbm [resolvable:$true] %s24_s16 }
   0x3   :  { %s1150_s17 = smov 128   ;;  %s1151_s18 = smov 8  }
   0x4   :  { %49 = dma.hbm_to_vmem [thread:$0]  %s42_s11, 2048, %s44_s13, [#allocation5], %s1150_s17, %s1150_s17, %s1151_s18  }
   0x5   :  { %s1152_s19 = smov [#allocation2]   ;;  %s56_s23 = sshll.u32 %s1787_s7, 4  ;;  %s57_s23 = int_to_ptr.hbm [resolvable:$true] %s56_s23 }
   0x6   :  { %s26_s20 = sshll.u32 %s1152_s19, 4  ;;  %s1153_s5 = smov [#allocation6]   ;;  %s27_s20 = int_to_ptr.vmem [resolvable:$true] %s26_s20 }
   0x7   :  { %32 = dma.hbm_to_vmem [thread:$0]  %s25_s16, 768, %s27_s20, [#allocation3], %s1150_s17, %s1150_s17, %s1151_s18  }
   0x8   :  { %s58_s24 = sshll.u32 %s1153_s5, 4  ;;  %s59_s24 = int_to_ptr.vmem [resolvable:$true] %s58_s24 }
   0x9   :  { %64 = dma.hbm_to_vmem [thread:$0]  %s57_s23, 2048, %s59_s24, [#allocation5], %s1150_s17, %s1150_s17, %s1151_s18  }
   0xa   :  { %1145 = dma.done.wait [#allocation3], 768  }
   0xb   :  { %1146 = vsyncadd [#allocation3], 4294966528 }
   0xc   :  { %1147 = dma.done.wait [#allocation5], 4096  }
   0xd   :  { %1148 = vsyncadd [#allocation5], 4294963200  ;;  %vm99_vm0 = vcmask 1043456   ;;  %v85_v0 = vld [vmem:[#allocation2 + $0x28] sm:$0xf]  ;;  %v84_v1 = vld [vmem:[#allocation2 + $0x20] sm:$0xff] }
   0xe   :  { %v83_v2 = vld [vmem:[#allocation2 + $0x18] sm:$0xff]  ;;  %vm95_vm1 = vcmask 359424   ;;  %v1154_v3 = vmov 0   ;;  %v101_v4 = vsel %vm99_vm0, %v85_v0, 0  ;;  %v1215_v5 = vand.u32 4294901760, %v84_v1  ;;  %v82_v7 = vld [vmem:[#allocation2 + $0x10] sm:$0xff] }
   0xf   :  { %1066 = vset.pattern.permute.xlu0 %v1154_v3  ;;  %v1217_v6 = vand.u32 4294901760, %v83_v2  ;;  %v81_v8 = vld [vmem:[#allocation2 + $0x8] sm:$0xff]  ;;  %v80_v9 = vld [vmem:[#allocation2] sm:$0xff]  ;;  %v1219_v10 = vand.u32 4294901760, %v101_v4  ;;  %v1221_v11 = vand.u32 4294901760, %v82_v7  ;;  %v341_v36 = vld [vmem:[#allocation4 + $0x68] sm:$0xff] }
  0x10   :  { %v1223_v12 = vand.u32 4294901760, %v81_v8  ;;  %v1225_v13 = vand.u32 4294901760, %v80_v9  ;;  %v79_v14 = vld [vmem:[%s1780_s0] sm:$0xff]  ;;  %v1236_v16 = vsub.f32 %v84_v1, %v1215_v5  ;;  %v343_v19 = vld [vmem:[#allocation4 + $0x78] sm:$0xff]  ;;  %v340_v41 = vld [vmem:[#allocation4 + $0x60] sm:$0xff]  ;;  %v1155_v51 = vmov 1  }
  0x11   :  { %v1233_v15 = vld [vmem:[%s1781_s1] sm:$0xff]  ;;  %v1239_v17 = vsub.f32 %v83_v2, %v1217_v6  ;;  %v97_v18 = vsel %vm95_vm1, %v79_v14, 0  ;;  %114 = vmatpush.msra.mxu0 %v1219_v10  ;;  %v1245_v20 = vsub.f32 %v101_v4, %v1219_v10  ;;  %230 = vmatpush.msra.mxu3 %v1219_v10  ;;  %v1249_v21 = vsub.f32 %v82_v7, %v1221_v11  ;;  %v339_v42 = vld [vmem:[#allocation4 + $0x58] sm:$0xff]  ;;  %v337_v48 = vld [vmem:[#allocation4 + $0x48] sm:$0xff] }
  0x12   :  { %90 = vperm.xlu0 %1066, %v1233_v15   ;;  %v1252_v22 = vsub.f32 %v81_v8, %v1223_v12  ;;  %v1254_v23 = vand.u32 4294901760, %v97_v18  ;;  %v152_v24 = vand.u32 4294901760, %v1236_v16  ;;  %v1259_v26 = vsub.f32 %v80_v9, %v1225_v13  ;;  %v342_v31 = vld [vmem:[#allocation4 + $0x70] sm:$0xff]  ;;  %v336_v58 = vld [vmem:[#allocation4 + $0x40] sm:$0xff]  ;;  %v335_v8 = vld [vmem:[#allocation4 + $0x38] sm:$0xff] }
  0x13   :  { %v158_v25 = vand.u32 4294901760, %v1239_v17  ;;  %v1261_v27 = vand.u32 4294901760, %v343_v19  ;;  %197 = vmatpush.msra.mxu2 %v1245_v20  ;;  %116 = vmatpush.msra.mxu0 %v1215_v5  ;;  %v146_v28 = vand.u32 4294901760, %v1245_v20  ;;  %v164_v29 = vand.u32 4294901760, %v1249_v21  ;;  %v338_v43 = vld [vmem:[#allocation4 + $0x50] sm:$0xff] }
  0x14   :  { %v1268_v30 = vsub.f32 %v97_v18, %v1254_v23  ;;  %v153_v32 = vsub.f32 %v1236_v16, %v152_v24  ;;  %232 = vmatpush.msra.mxu3 %v1215_v5  ;;  %v170_v34 = vand.u32 4294901760, %v1252_v22  ;;  %v176_v38 = vand.u32 4294901760, %v1259_v26 }
  0x15   :  { %v159_v33 = vsub.f32 %v1239_v17, %v158_v25  ;;  %v1279_v35 = vsub.f32 %v343_v19, %v1261_v27  ;;  %v147_v37 = vsub.f32 %v1245_v20, %v146_v28  ;;  %200 = vmatpush.msra.mxu2 %v1236_v16  ;;  %118 = vmatpush.msra.mxu0 %v1217_v6  ;;  %v1300_v52 = vand.u32 4294901760, %v342_v31 }
  0x16   :  { %v127_v39 = vand.u32 4294901760, %v1268_v30  ;;  %234 = vmatpush.msra.mxu3 %v1217_v6  ;;  %v154_v45 = vand.u32 4294901760, %v153_v32  ;;  %v165_v46 = vsub.f32 %v1249_v21, %v164_v29  ;;  %v171_v50 = vsub.f32 %v1252_v22, %v170_v34 }
  0x17   :  { %v391_v40 = vand.u32 4294901760, %v1279_v35  ;;  %v148_v44 = vand.u32 4294901760, %v147_v37  ;;  %203 = vmatpush.msra.mxu2 %v1239_v17  ;;  %120 = vmatpush.msra.mxu0 %v1221_v11  ;;  %v160_v49 = vand.u32 4294901760, %v159_v33  ;;  %v1302_v53 = vand.u32 4294901760, %v341_v36 }
  0x18   :  { %v128_v47 = vsub.f32 %v1268_v30, %v127_v39  ;;  %236 = vmatpush.msra.mxu3 %v1221_v11  ;;  %v177_v54 = vsub.f32 %v1259_v26, %v176_v38  ;;  %v1308_v55 = vand.u32 4294901760, %v340_v41  ;;  %v1310_v56 = vand.u32 4294901760, %v339_v42 }
  0x19   :  { %149 = vmatpush.msra.mxu1 %v148_v44  ;;  %206 = vmatpush.msra.mxu2 %v1249_v21  ;;  %v1312_v57 = vand.u32 4294901760, %v338_v43  ;;  %v392_v59 = vsub.f32 %v1279_v35, %v391_v40  ;;  %v1320_v60 = vsub.f32 %v342_v31, %v1300_v52  ;;  %v1323_v61 = vsub.f32 %v341_v36, %v1302_v53  ;;  %v330_v21 = vld [vmem:[#allocation4 + $0x10] sm:$0xff] }
  0x1a   :  { %1067 = vset.pattern.permute.xlu0 %v1155_v51  ;;  %122 = vmatpush.msra.mxu0 %v1223_v12  ;;  %v1325_v62 = vand.u32 4294901760, %v337_v48  ;;  %v166_v63 = vand.u32 4294901760, %v165_v46  ;;  %v129_v0 = vand.u32 4294901760, %v128_v47  ;;  %v1329_v1 = vsub.f32 %v340_v41, %v1308_v55  ;;  %v333_v41 = vld [vmem:[#allocation4 + $0x28] sm:$0xff] }
  0x1b   :  { %238 = vmatpush.msra.mxu3 %v1223_v12  ;;  %155 = vmatpush.msra.mxu1 %v154_v45  ;;  %v1332_v2 = vsub.f32 %v339_v42, %v1310_v56  ;;  %v397_v3 = vand.u32 4294901760, %v1320_v60  ;;  %v403_v4 = vand.u32 4294901760, %v1323_v61  ;;  %v1338_v7 = vand.u32 4294901760, %v336_v58 }
  0x1c   :  { %209 = vmatpush.msra.mxu2 %v1252_v22  ;;  %124 = vmatpush.msra.mxu0 %v1225_v13  ;;  %v172_v9 = vand.u32 4294901760, %v171_v50  ;;  %v409_v14 = vand.u32 4294901760, %v1329_v1  ;;  %v1343_v18 = vsub.f32 %v338_v43, %v1312_v57  ;;  %v393_v19 = vand.u32 4294901760, %v392_v59  ;;  %v329_v22 = vld [vmem:[#allocation4 + $0x8] sm:$0xff] }
  0x1d   :  { %240 = vmatpush.msra.mxu3 %v1225_v13  ;;  %161 = vmatpush.msra.mxu1 %v160_v49  ;;  %v398_v31 = vsub.f32 %v1320_v60, %v397_v3  ;;  %v1352_v32 = vsub.f32 %v337_v48, %v1325_v62  ;;  %v178_v33 = vand.u32 4294901760, %v177_v54  ;;  %v404_v36 = vsub.f32 %v1323_v61, %v403_v4 }
  0x1e   :  { %212 = vmatpush.msra.mxu2 %v1259_v26  ;;  %261 = vmatpush.msrb.mxu0 %v146_v28  ;;  %v415_v20 = vand.u32 4294901760, %v1332_v2  ;;  %v1358_v28 = vand.u32 4294901760, %v335_v8  ;;  %v1363_v37 = vsub.f32 %v336_v58, %v1338_v7  ;;  %v410_v43 = vsub.f32 %v1329_v1, %v409_v14  ;;  %v328_v26 = vld [vmem:[#allocation4] sm:$0xff] }
  0x1f   :  { %215 = vmatmul.f32.vlgmr.msra.gmra.mxu2 %v1268_v30  ;;  %167 = vmatpush.msra.mxu1 %v166_v63  ;;  %v334_v30 = vld [vmem:[#allocation4 + $0x30] sm:$0xff]  ;;  %v399_v42 = vand.u32 4294901760, %v398_v31  ;;  %v421_v44 = vand.u32 4294901760, %v1343_v18  ;;  %v427_v16 = vand.u32 4294901760, %v1352_v32  ;;  %v405_v45 = vand.u32 4294901760, %v404_v36 }
  0x20   :  { %130 = vmatmul.f32.vlgmr.msra.gmra.mxu0 %v129_v0  ;;  %244 = vmatmul.f32.vlgmr.msra.gmra.mxu3 %v127_v39  ;;  %v332_v39 = vld [vmem:[#allocation4 + $0x20] sm:$0xff]  ;;  %v1380_v46 = vsub.f32 %v335_v8, %v1358_v28  ;;  %v1382_v47 = vand.u32 4294901760, %v333_v41  ;;  %v433_v17 = vand.u32 4294901760, %v1363_v37  ;;  %v411_v48 = vand.u32 4294901760, %v410_v43 }
  0x21   :  { %265 = vmatpush.msrb.mxu0 %v152_v24  ;;  %173 = vmatpush.msra.mxu1 %v172_v9  ;;  %v1373_v24 = vand.u32 4294901760, %v334_v30  ;;  %v422_v49 = vsub.f32 %v1343_v18, %v421_v44  ;;  %v1395_v51 = vand.u32 4294901760, %v332_v39  ;;  %v1421_v8 = vand.u32 4294901760, %v330_v21 }
  0x22   :  { %316 = vperm.xlu0 %1067, %v1233_v15   ;;  %394 = vmatpush.msrb.mxu3 %v393_v19  ;;  %v416_v15 = vsub.f32 %v1332_v2, %v415_v20  ;;  %v439_v54 = vand.u32 4294901760, %v1380_v46  ;;  %v1406_v58 = vsub.f32 %v333_v41, %v1382_v47  ;;  %v1433_v31 = vand.u32 4294901760, %v329_v22 }
  0x23   :  { %269 = vmatpush.msrb.mxu0 %v158_v25  ;;  %179 = vmatpush.msra.mxu1 %v178_v33  ;;  %v331_v25 = vld [vmem:[#allocation4 + $0x18] sm:$0xff]  ;;  %v1393_v50 = vsub.f32 %v334_v30, %v1373_v24  ;;  %v1419_v0 = vsub.f32 %v332_v39, %v1395_v51  ;;  %v1442_v30 = vsub.f32 %v330_v21, %v1421_v8  ;;  %v1445_v41 = vand.u32 4294901760, %v328_v26 }
  0x24   :  { %349 = vmatpush.msrb.mxu2 %v1261_v27  ;;  %181 = vmatmul.f32.vlgmr.msra.gmra.mxu1 %v1254_v23  ;;  %v1408_v59 = vand.u32 4294901760, %v331_v25  ;;  %v451_v9 = vand.u32 4294901760, %v1406_v58  ;;  %v1455_v39 = vsub.f32 %v329_v22, %v1433_v31  ;;  %vm1051_vm2 = vcmask 15360  }
  0x25   :  { %298 = vmatpush.msrb.mxu1 %v1219_v10  ;;  %273 = vmatpush.msrb.mxu0 %v164_v29  ;;  %v428_v10 = vsub.f32 %v1352_v32, %v427_v16  ;;  %v417_v29 = vand.u32 4294901760, %v416_v15  ;;  %v445_v63 = vand.u32 4294901760, %v1393_v50  ;;  %v457_v36 = vand.u32 4294901760, %v1419_v0 }
  0x26   :  { %400 = vmatpush.msrb.mxu3 %v399_v42  ;;  %351 = vmatpush.msrb.mxu2 %v1300_v52  ;;  %v1430_v19 = vsub.f32 %v331_v25, %v1408_v59  ;;  %v452_v42 = vsub.f32 %v1406_v58, %v451_v9  ;;  %v1465_v15 = vsub.f32 %v328_v26, %v1445_v41 }
  0x27   :  { %300 = vmatpush.msrb.mxu1 %v1215_v5  ;;  %277 = vmatpush.msrb.mxu0 %v170_v34  ;;  %v434_v5 = vsub.f32 %v1363_v37, %v433_v17  ;;  %v423_v34 = vand.u32 4294901760, %v422_v49  ;;  %v446_v33 = vsub.f32 %v1393_v50, %v445_v63  ;;  %v475_v49 = vand.u32 4294901760, %v1455_v39 }
  0x28   :  { %406 = vmatpush.msrb.mxu3 %v405_v45  ;;  %353 = vmatpush.msrb.mxu2 %v1302_v53  ;;  %v463_v43 = vand.u32 4294901760, %v1430_v19  ;;  %v469_v45 = vand.u32 4294901760, %v1442_v30  ;;  %v453_v25 = vand.u32 4294901760, %v452_v42 }
  0x29   :  { %302 = vmatpush.msrb.mxu1 %v1217_v6  ;;  %281 = vmatpush.msrb.mxu0 %v176_v38  ;;  %v429_v6 = vand.u32 4294901760, %v428_v10  ;;  %v440_v38 = vsub.f32 %v1380_v46, %v439_v54  ;;  %v476_v22 = vsub.f32 %v1455_v39, %v475_v49 }
  0x2a   :  { %283 = vmatmul.f32.vlgmr.msrb.gmra.mxu0 %v1254_v23  ;;  %412 = vmatpush.msrb.mxu3 %v411_v48  ;;  %v464_v48 = vsub.f32 %v1430_v19, %v463_v43  ;;  %v470_v21 = vsub.f32 %v1442_v30, %v469_v45 }
  0x2b   :  { %304 = vmatpush.msrb.mxu1 %v1221_v11  ;;  %492 = vmatpush.msra.mxu0 %v1279_v35  ;;  %v435_v11 = vand.u32 4294901760, %v434_v5  ;;  %v477_v26 = vand.u32 4294901760, %v476_v22 }
  0x2c   :  { %418 = vmatpush.msrb.mxu3 %v417_v29  ;;  %355 = vmatpush.msrb.mxu2 %v1308_v55  ;;  %v481_v29 = vand.u32 4294901760, %v1465_v15  ;;  %v465_v5 = vand.u32 4294901760, %v464_v48  ;;  %v697_v48 = vld [vmem:[#allocation6 + $0x38] sm:$0xff] }
  0x2d   :  { %306 = vmatpush.msrb.mxu1 %v1223_v12  ;;  %495 = vmatpush.msra.mxu0 %v1320_v60  ;;  %v441_v12 = vand.u32 4294901760, %v440_v38 }
  0x2e   :  { %424 = vmatpush.msrb.mxu3 %v423_v34  ;;  %357 = vmatpush.msrb.mxu2 %v1310_v56  ;;  %v471_v34 = vand.u32 4294901760, %v470_v21 }
  0x2f   :  { %308 = vmatpush.msrb.mxu1 %v1225_v13  ;;  %v447_v13 = vand.u32 4294901760, %v446_v33  ;;  %498 = vmatpush.msra.mxu0 %v1323_v61 }
  0x30   :  { %310 = vmatmul.f32.vlgmr.msrb.gmra.mxu1 %v1254_v23  ;;  %430 = vmatpush.msrb.mxu3 %v429_v6  ;;  %v458_v23 = vsub.f32 %v1419_v0, %v457_v36  ;;  %v482_v6 = vsub.f32 %v1465_v15, %v481_v29 }
  0x31   :  { %359 = vmatpush.msrb.mxu2 %v1312_v57  ;;  %545 = vmatpush.msra.mxu1 %v1261_v27 }
  0x32   :  { %436 = vmatpush.msrb.mxu3 %v435_v11  ;;  %501 = vmatpush.msra.mxu0 %v1329_v1  ;;  %v459_v10 = vand.u32 4294901760, %v458_v23  ;;  %v483_v38 = vand.u32 4294901760, %v482_v6  ;;  %v1069_v1 = vld [vmem:[%s1783_s3 + $0x1] ss:$0 sm:$0xff]  ;;  %v694_v6 = vld [vmem:[#allocation6 + $0x20] sm:$0xff] }
  0x33   :  { %361 = vmatpush.msrb.mxu2 %v1325_v62  ;;  %547 = vmatpush.msra.mxu1 %v1300_v52 }
  0x34   :  { %442 = vmatpush.msrb.mxu3 %v441_v12  ;;  %504 = vmatpush.msra.mxu0 %v1332_v2 }
  0x35   :  { %363 = vmatpush.msrb.mxu2 %v1338_v7  ;;  %549 = vmatpush.msra.mxu1 %v1302_v53 }
  0x36   :  { %448 = vmatpush.msrb.mxu3 %v447_v13  ;;  %507 = vmatpush.msra.mxu0 %v1343_v18 }
  0x37   :  { %365 = vmatpush.msrb.mxu2 %v1358_v28  ;;  %551 = vmatpush.msra.mxu1 %v1308_v55 }
  0x38   :  { %454 = vmatpush.msrb.mxu3 %v453_v25  ;;  %510 = vmatpush.msra.mxu0 %v1352_v32 }
  0x39   :  { %367 = vmatpush.msrb.mxu2 %v1373_v24  ;;  %553 = vmatpush.msra.mxu1 %v1310_v56 }
  0x3a   :  { %460 = vmatpush.msrb.mxu3 %v459_v10  ;;  %513 = vmatpush.msra.mxu0 %v1363_v37  ;;  %v701_v37 = vld [vmem:[#allocation6 + $0x58] sm:$0xff] }
  0x3b   :  { %369 = vmatpush.msrb.mxu2 %v1382_v47  ;;  %555 = vmatpush.msra.mxu1 %v1312_v57 }
  0x3c   :  { %466 = vmatpush.msrb.mxu3 %v465_v5  ;;  %516 = vmatpush.msra.mxu0 %v1380_v46  ;;  %v1581_v46 = vand.u32 4294901760, %v701_v37 }
  0x3d   :  { %371 = vmatpush.msrb.mxu2 %v1395_v51  ;;  %557 = vmatpush.msra.mxu1 %v1325_v62 }
  0x3e   :  { %472 = vmatpush.msrb.mxu3 %v471_v34  ;;  %519 = vmatpush.msra.mxu0 %v1393_v50 }
  0x3f   :  { %373 = vmatpush.msrb.mxu2 %v1408_v59  ;;  %559 = vmatpush.msra.mxu1 %v1338_v7 }
  0x40   :  { %478 = vmatpush.msrb.mxu3 %v477_v26  ;;  %522 = vmatpush.msra.mxu0 %v1406_v58 }
  0x41   :  { %375 = vmatpush.msrb.mxu2 %v1421_v8  ;;  %561 = vmatpush.msra.mxu1 %v1358_v28 }
  0x42   :  { %484 = vmatpush.msrb.mxu3 %v483_v38  ;;  %525 = vmatpush.msra.mxu0 %v1419_v0  ;;  %v1601_v0 = vsub.f32 %v701_v37, %v1581_v46 }
  0x43   :  { %377 = vmatpush.msrb.mxu2 %v1433_v31  ;;  %563 = vmatpush.msra.mxu1 %v1373_v24 }
  0x44   :  { %653 = vmatpush.msra.mxu3 %v1261_v27  ;;  %528 = vmatpush.msra.mxu0 %v1430_v19  ;;  %v1068_v27 = vld [vmem:[%s1783_s3] ss:$0 sm:$0xff]  ;;  %v777_v12 = vand.u32 4294901760, %v1601_v0 }
  0x45   :  { %379 = vmatpush.msrb.mxu2 %v1445_v41  ;;  %565 = vmatpush.msra.mxu1 %v1382_v47 }
  0x46   :  { %655 = vmatpush.msra.mxu3 %v1300_v52  ;;  %531 = vmatpush.msra.mxu0 %v1442_v30  ;;  %v1070_v30 = vld [vmem:[%s1784_s4] ss:$0 sm:$0xff]  ;;  %v778_v22 = vsub.f32 %v1601_v0, %v777_v12 }
  0x47   :  { %586 = vmatpush.msra.mxu2 %v391_v40  ;;  %567 = vmatpush.msra.mxu1 %v1395_v51 }
  0x48   :  { %657 = vmatpush.msra.mxu3 %v1302_v53  ;;  %534 = vmatpush.msra.mxu0 %v1455_v39 }
  0x49   :  { %590 = vmatpush.msra.mxu2 %v397_v3  ;;  %569 = vmatpush.msra.mxu1 %v1408_v59  ;;  %v705_v3 = vld [vmem:[#allocation6 + $0x78] sm:$0xff] }
  0x4a   :  { %659 = vmatpush.msra.mxu3 %v1308_v55  ;;  %537 = vmatpush.msra.mxu0 %v1465_v15  ;;  %v1573_v18 = vand.u32 4294901760, %v705_v3 }
  0x4b   :  { %594 = vmatpush.msra.mxu2 %v403_v4  ;;  %571 = vmatpush.msra.mxu1 %v1421_v8  ;;  %v704_v4 = vld [vmem:[#allocation6 + $0x70] sm:$0xff] }
  0x4c   :  { %661 = vmatpush.msra.mxu3 %v1310_v56  ;;  %v1575_v32 = vand.u32 4294901760, %v704_v4  ;;  %v1586_v50 = vsub.f32 %v705_v3, %v1573_v18  ;;  %711 = vmatpush.msrb.mxu0 %v1573_v18  ;;  %v779_v3 = vand.u32 4294901760, %v778_v22 }
  0x4d   :  { %598 = vmatpush.msra.mxu2 %v409_v14  ;;  %573 = vmatpush.msra.mxu1 %v1433_v31 }
  0x4e   :  { %663 = vmatpush.msra.mxu3 %v1312_v57  ;;  %713 = vmatpush.msrb.mxu0 %v1575_v32 }
  0x4f   :  { %602 = vmatpush.msra.mxu2 %v415_v20  ;;  %575 = vmatpush.msra.mxu1 %v1445_v41 }
  0x50   :  { %665 = vmatpush.msra.mxu3 %v1325_v62 }
  0x51   :  { %606 = vmatpush.msra.mxu2 %v421_v44  ;;  %v700_v44 = vld [vmem:[#allocation6 + $0x50] sm:$0xff] }
  0x52   :  { %667 = vmatpush.msra.mxu3 %v1338_v7  ;;  %v703_v7 = vld [vmem:[#allocation6 + $0x68] sm:$0xff] }
  0x53   :  { %610 = vmatpush.msra.mxu2 %v427_v16  ;;  %v1577_v20 = vand.u32 4294901760, %v703_v7 }
  0x54   :  { %669 = vmatpush.msra.mxu3 %v1358_v28  ;;  %v702_v28 = vld [vmem:[#allocation6 + $0x60] sm:$0xff] }
  0x55   :  { %614 = vmatpush.msra.mxu2 %v433_v17  ;;  %v699_v17 = vld [vmem:[#allocation6 + $0x48] sm:$0xff]  ;;  %715 = vmatpush.msrb.mxu0 %v1577_v20 }
  0x56   :  { %671 = vmatpush.msra.mxu3 %v1373_v24  ;;  %v1579_v24 = vand.u32 4294901760, %v702_v28  ;;  %v1595_v58 = vand.u32 4294901760, %v699_v17 }
  0x57   :  { %618 = vmatpush.msra.mxu2 %v439_v54  ;;  %v1592_v54 = vsub.f32 %v703_v7, %v1577_v20 }
  0x58   :  { %673 = vmatpush.msra.mxu3 %v1382_v47  ;;  %v1583_v47 = vand.u32 4294901760, %v700_v44  ;;  %v1616_v42 = vsub.f32 %v699_v17, %v1595_v58  ;;  %717 = vmatpush.msrb.mxu0 %v1579_v24 }
  0x59   :  { %622 = vmatpush.msra.mxu2 %v445_v63  ;;  %v1598_v63 = vsub.f32 %v702_v28, %v1579_v24  ;;  %v765_v33 = vand.u32 4294901760, %v1592_v54 }
  0x5a   :  { %675 = vmatpush.msra.mxu3 %v1395_v51  ;;  %v1589_v51 = vsub.f32 %v704_v4, %v1575_v32  ;;  %v789_v34 = vand.u32 4294901760, %v1616_v42  ;;  %719 = vmatpush.msrb.mxu0 %v1581_v46 }
  0x5b   :  { %626 = vmatpush.msra.mxu2 %v451_v9  ;;  %v698_v9 = vld [vmem:[#allocation6 + $0x40] sm:$0xff]  ;;  %v766_v13 = vsub.f32 %v1592_v54, %v765_v33 }
  0x5c   :  { %677 = vmatpush.msra.mxu3 %v1408_v59  ;;  %v759_v11 = vand.u32 4294901760, %v1589_v51  ;;  %v1628_v23 = vand.u32 4294901760, %v698_v9  ;;  %721 = vmatpush.msrb.mxu0 %v1583_v47 }
  0x5d   :  { %630 = vmatpush.msra.mxu2 %v457_v36  ;;  %v767_v26 = vand.u32 4294901760, %v766_v13 }
  0x5e   :  { %679 = vmatpush.msra.mxu3 %v1421_v8  ;;  %v1604_v8 = vsub.f32 %v700_v44, %v1583_v47  ;;  %v760_v39 = vsub.f32 %v1589_v51, %v759_v11  ;;  %v1640_v38 = vsub.f32 %v698_v9, %v1628_v23  ;;  %723 = vmatpush.msrb.mxu0 %v1595_v58 }
  0x5f   :  { %634 = vmatpush.msra.mxu2 %v463_v43 }
  0x60   :  { %681 = vmatpush.msra.mxu3 %v1433_v31  ;;  %v753_v31 = vand.u32 4294901760, %v1586_v50  ;;  %v783_v25 = vand.u32 4294901760, %v1604_v8  ;;  %v761_v21 = vand.u32 4294901760, %v760_v39  ;;  %725 = vmatpush.msrb.mxu0 %v1628_v23 }
  0x61   :  { %638 = vmatpush.msra.mxu2 %v469_v45 }
  0x62   :  { %683 = vmatpush.msra.mxu3 %v1445_v41  ;;  %v771_v41 = vand.u32 4294901760, %v1598_v63  ;;  %v754_v43 = vsub.f32 %v1586_v50, %v753_v31 }
  0x63   :  { %642 = vmatpush.msra.mxu2 %v475_v49  ;;  %v696_v49 = vld [vmem:[#allocation6 + $0x30] sm:$0xff] }
  0x64   :  { %v772_v15 = vsub.f32 %v1598_v63, %v771_v41  ;;  %v755_v10 = vand.u32 4294901760, %v754_v43 }
  0x65   :  { %646 = vmatpush.msra.mxu2 %v481_v29  ;;  %v695_v29 = vld [vmem:[#allocation6 + $0x28] sm:$0xff] }
  0x66   :  { %756 = vmatpush.msrb.mxu1 %v755_v10 }
  0x68   :  { %762 = vmatpush.msrb.mxu1 %v761_v21 }
  0x6a   :  { %768 = vmatpush.msrb.mxu1 %v767_v26 }
  0x84   :  { %v91_v35 = vpop.permute.xlu0 %90 }
  0x85   :  { %v94_v40 = vmul.f32 %v1068_v27, %v91_v35  ;;  %v1643_v27 = vand.u32 4294901760, %v697_v48  ;;  %v1645_v35 = vand.u32 4294901760, %v696_v49 }
  0x87   :  { %727 = vmatpush.msrb.mxu0 %v1643_v27 }
  0x89   :  { %729 = vmatpush.msrb.mxu0 %v1645_v35 }
  0x94   :  { %v317_v14 = vpop.permute.xlu0 %316 }
  0x95   :  { %v320_v59 = vmul.f32 %v1069_v1, %v317_v14 }
  0x9d   :  { %v131_v52 = vpop.f32.mrf.mxu0 }
  0x9e   :  { %v132_v53 = vadd.f32 %v131_v52, %v94_v40  ;;  %v773_v52 = vand.u32 4294901760, %v772_v15 }
  0xa0   :  { %774 = vmatpush.msrb.mxu1 %v773_v52 }
  0xa1   :  { %v182_v55 = vpop.f32.mrf.mxu1 }
  0xa2   :  { %v216_v56 = vpop.f32.mrf.mxu2  ;;  %v183_v57 = vadd.f32 %v182_v55, %v132_v53  ;;  %v784_v53 = vsub.f32 %v1604_v8, %v783_v25  ;;  %v1650_v55 = vand.u32 4294901760, %v695_v29  ;;  %780 = vmatpush.msrb.mxu1 %v779_v3 }
  0xa3   :  { %v245_v60 = vpop.f32.mrf.mxu3 }
  0xa4   :  { %v217_v61 = vadd.f32 %v216_v56, %v183_v57  ;;  %v693_v56 = vld [vmem:[#allocation6 + $0x18] sm:$0xff]  ;;  %v795_v57 = vand.u32 4294901760, %v1640_v38  ;;  %v1668_v7 = vsub.f32 %v695_v29, %v1650_v55  ;;  %v785_v37 = vand.u32 4294901760, %v784_v53  ;;  %731 = vmatpush.msrb.mxu0 %v1650_v55  ;;  %v691_v53 = vld [vmem:[#allocation6 + $0x8] sm:$0xff] }
  0xa5   :  { %v1670_v14 = vand.u32 4294901760, %v693_v56 }
  0xa6   :  { %v246_v2 = vadd.f32 %v245_v60, %v217_v61  ;;  %v1654_v60 = vsub.f32 %v697_v48, %v1643_v27  ;;  %v1658_v61 = vsub.f32 %v696_v49, %v1645_v35  ;;  %v796_v44 = vsub.f32 %v1640_v38, %v795_v57  ;;  %786 = vmatpush.msrb.mxu1 %v785_v37 }
  0xa7   :  { %v284_v62 = vpop.f32.mrf.mxu0 }
  0xa8   :  { %v285_v16 = vadd.f32 %v284_v62, %v246_v2  ;;  %v1660_v62 = vand.u32 4294901760, %v694_v6  ;;  %v790_v2 = vsub.f32 %v1616_v42, %v789_v34  ;;  %v801_v4 = vand.u32 4294901760, %v1654_v60 }
  0xa9   :  { %v797_v39 = vand.u32 4294901760, %v796_v44 }
  0xaa   :  { %v1678_v17 = vsub.f32 %v694_v6, %v1660_v62  ;;  %v791_v9 = vand.u32 4294901760, %v790_v2  ;;  %733 = vmatpush.msrb.mxu0 %v1660_v62  ;;  %v690_v2 = vld [vmem:[#allocation6] sm:$0xff] }
  0xab   :  { %v740_v37 = vand.u32 4294901760, %v690_v2 }
  0xac   :  { %792 = vmatpush.msrb.mxu1 %v791_v9  ;;  %735 = vmatpush.msrb.mxu0 %v1670_v14 }
  0xad   :  { %v311_v19 = vpop.f32.mrf.mxu1  ;;  %v842_v9 = vsub.f32 %v690_v2, %v740_v37 }
  0xae   :  { %v312_v36 = vadd.f32 %v311_v19, %v285_v16  ;;  %v807_v16 = vand.u32 4294901760, %v1658_v61  ;;  %v802_v19 = vsub.f32 %v1654_v60, %v801_v4  ;;  %798 = vmatpush.msrb.mxu1 %v797_v39 }
  0xaf   :  { %v843_v39 = vand.u32 4294901760, %v842_v9 }
  0xb0   :  { %v321_v45 = vadd.f32 %v320_v59, %v312_v36  ;;  %v813_v36 = vand.u32 4294901760, %v1668_v7  ;;  %v808_v13 = vsub.f32 %v1658_v61, %v807_v16  ;;  %v803_v48 = vand.u32 4294901760, %v802_v19 }
  0xb2   :  { %v326_v5 = vadd.f32 %v1070_v30, %v321_v45  ;;  %v1687_v30 = vsub.f32 %v693_v56, %v1670_v14  ;;  %v819_v45 = vand.u32 4294901760, %v1678_v17  ;;  %v814_v49 = vsub.f32 %v1668_v7, %v813_v36  ;;  %804 = vmatpush.msrb.mxu1 %v803_v48 }
  0xb3   :  { %v809_v21 = vand.u32 4294901760, %v808_v13 }
  0xb4   :  { %v327_v40 = vmax.f32 %v326_v5, 0.0  ;;  %v825_v10 = vand.u32 4294901760, %v1687_v30  ;;  %v820_v29 = vsub.f32 %v1678_v17, %v819_v45  ;;  %v815_v5 = vand.u32 4294901760, %v814_v49 }
  0xb5   :  { %810 = vmatpush.msrb.mxu1 %v809_v21 }
  0xb6   :  { %v380_v1 = vand.u32 4294901760, %v327_v40  ;;  %v826_v22 = vsub.f32 %v1687_v30, %v825_v10  ;;  %v821_v6 = vand.u32 4294901760, %v820_v29 }
  0xb7   :  { %816 = vmatpush.msrb.mxu1 %v815_v5 }
  0xb8   :  { %v381_v28 = vsub.f32 %v327_v40, %v380_v1  ;;  %486 = vmatmul.f32.vlgmr.msrb.gmra.mxu3 %v380_v1  ;;  %v827_v26 = vand.u32 4294901760, %v826_v22  ;;  %v692_v40 = vld [vmem:[#allocation6 + $0x10] sm:$0xff] }
  0xb9   :  { %907 = vmatpush.msrb.mxu3 %v1573_v18  ;;  %822 = vmatpush.msrb.mxu1 %v821_v6  ;;  %v736_v52 = vand.u32 4294901760, %v692_v40 }
  0xba   :  { %540 = vmatmul.f32.vlgmr.msra.gmra.mxu0 %v381_v28  ;;  %v382_v59 = vand.u32 4294901760, %v381_v28 }
  0xbb   :  { %909 = vmatpush.msrb.mxu3 %v1575_v32  ;;  %828 = vmatpush.msrb.mxu1 %v827_v26  ;;  %v830_v56 = vsub.f32 %v692_v40, %v736_v52 }
  0xbc   :  { %579 = vmatmul.f32.vlgmr.msra.gmra.mxu1 %v382_v59  ;;  %v383_v43 = vsub.f32 %v381_v28, %v382_v59  ;;  %737 = vmatpush.msrb.mxu0 %v736_v52 }
  0xbd   :  { %911 = vmatpush.msrb.mxu3 %v1577_v20  ;;  %v831_v3 = vand.u32 4294901760, %v830_v56 }
  0xbe   :  { %v384_v15 = vand.u32 4294901760, %v383_v43 }
  0xbf   :  { %913 = vmatpush.msrb.mxu3 %v1579_v24  ;;  %v832_v44 = vsub.f32 %v830_v56, %v831_v3 }
  0xc0   :  { %385 = vmatmul.f32.vlgmr.msrb.gmra.mxu2 %v384_v15  ;;  %685 = vmatmul.f32.vlgmr.msra.gmra.mxu3 %v380_v1  ;;  %v844_v15 = vsub.f32 %v842_v9, %v843_v39 }
  0xc1   :  { %854 = vmatpush.msrb.mxu2 %v1586_v50  ;;  %915 = vmatpush.msrb.mxu3 %v1581_v46  ;;  %v833_v19 = vand.u32 4294901760, %v832_v44 }
  0xc2   :  { %v845_v48 = vand.u32 4294901760, %v844_v15 }
  0xc3   :  { %857 = vmatpush.msrb.mxu2 %v1589_v51  ;;  %917 = vmatpush.msrb.mxu3 %v1583_v47 }
  0xc4   :  { %834 = vmatpush.msrb.mxu1 %v833_v19 }
  0xc5   :  { %860 = vmatpush.msrb.mxu2 %v1592_v54  ;;  %919 = vmatpush.msrb.mxu3 %v1595_v58 }
  0xc7   :  { %863 = vmatpush.msrb.mxu2 %v1598_v63  ;;  %921 = vmatpush.msrb.mxu3 %v1628_v23 }
  0xc8   :  { %648 = vmatmul.f32.vlgmr.msra.gmra.mxu2 %v380_v1  ;;  %v738_v1 = vand.u32 4294901760, %v691_v53 }
  0xc9   :  { %866 = vmatpush.msrb.mxu2 %v1601_v0  ;;  %923 = vmatpush.msrb.mxu3 %v1643_v27 }
  0xca   :  { %v836_v28 = vsub.f32 %v691_v53, %v738_v1  ;;  %739 = vmatpush.msrb.mxu0 %v738_v1 }
  0xcb   :  { %869 = vmatpush.msrb.mxu2 %v1604_v8  ;;  %925 = vmatpush.msrb.mxu3 %v1645_v35 }
  0xcc   :  { %v837_v59 = vand.u32 4294901760, %v836_v28  ;;  %741 = vmatpush.msrb.mxu0 %v740_v37 }
  0xcd   :  { %872 = vmatpush.msrb.mxu2 %v1616_v42  ;;  %927 = vmatpush.msrb.mxu3 %v1650_v55 }
  0xce   :  { %948 = vmatpush.msra.mxu0 %v753_v31  ;;  %v838_v43 = vsub.f32 %v836_v28, %v837_v59 }
  0xcf   :  { %875 = vmatpush.msrb.mxu2 %v1640_v38  ;;  %929 = vmatpush.msrb.mxu3 %v1660_v62 }
  0xd0   :  { %952 = vmatpush.msra.mxu0 %v759_v11  ;;  %v839_v13 = vand.u32 4294901760, %v838_v43 }
  0xd1   :  { %878 = vmatpush.msrb.mxu2 %v1654_v60  ;;  %931 = vmatpush.msrb.mxu3 %v1670_v14 }
  0xd2   :  { %956 = vmatpush.msra.mxu0 %v765_v33  ;;  %840 = vmatpush.msrb.mxu1 %v839_v13 }
  0xd3   :  { %881 = vmatpush.msrb.mxu2 %v1658_v61  ;;  %933 = vmatpush.msrb.mxu3 %v736_v52 }
  0xd4   :  { %960 = vmatpush.msra.mxu0 %v771_v41  ;;  %846 = vmatpush.msrb.mxu1 %v845_v48 }
  0xd5   :  { %884 = vmatpush.msrb.mxu2 %v1668_v7  ;;  %935 = vmatpush.msrb.mxu3 %v738_v1 }
  0xd6   :  { %1015 = vmatpush.msra.mxu1 %v1573_v18  ;;  %964 = vmatpush.msra.mxu0 %v777_v12  ;;  %v1071_v18 = vld [vmem:[%s1786_s6] ss:$0 sm:$0xff] }
  0xd7   :  { %887 = vmatpush.msrb.mxu2 %v1678_v17  ;;  %937 = vmatpush.msrb.mxu3 %v740_v37 }
  0xd8   :  { %1017 = vmatpush.msra.mxu1 %v1575_v32  ;;  %968 = vmatpush.msra.mxu0 %v783_v25 }
  0xd9   :  { %890 = vmatpush.msrb.mxu2 %v1687_v30 }
  0xda   :  { %1019 = vmatpush.msra.mxu1 %v1577_v20  ;;  %972 = vmatpush.msra.mxu0 %v789_v34 }
  0xdb   :  { %893 = vmatpush.msrb.mxu2 %v830_v56 }
  0xdc   :  { %1021 = vmatpush.msra.mxu1 %v1579_v24  ;;  %976 = vmatpush.msra.mxu0 %v795_v57 }
  0xdd   :  { %896 = vmatpush.msrb.mxu2 %v836_v28 }
  0xde   :  { %1023 = vmatpush.msra.mxu1 %v1581_v46  ;;  %980 = vmatpush.msra.mxu0 %v801_v4 }
  0xdf   :  { %899 = vmatpush.msrb.mxu2 %v842_v9 }
  0xe0   :  { %1025 = vmatpush.msra.mxu1 %v1583_v47  ;;  %984 = vmatpush.msra.mxu0 %v807_v16 }
  0xe2   :  { %1027 = vmatpush.msra.mxu1 %v1595_v58  ;;  %988 = vmatpush.msra.mxu0 %v813_v36 }
  0xe4   :  { %1029 = vmatpush.msra.mxu1 %v1628_v23  ;;  %992 = vmatpush.msra.mxu0 %v819_v45  ;;  %v1072_v23 = vld [vmem:[%s1788_s8] ss:$0 sm:$0xff] }
  0xe6   :  { %1031 = vmatpush.msra.mxu1 %v1643_v27  ;;  %996 = vmatpush.msra.mxu0 %v825_v10 }
  0xe8   :  { %1033 = vmatpush.msra.mxu1 %v1645_v35  ;;  %1000 = vmatpush.msra.mxu0 %v831_v3 }
  0xea   :  { %1035 = vmatpush.msra.mxu1 %v1650_v55  ;;  %1004 = vmatpush.msra.mxu0 %v837_v59 }
  0xec   :  { %1037 = vmatpush.msra.mxu1 %v1660_v62  ;;  %1008 = vmatpush.msra.mxu0 %v843_v39 }
  0xee   :  { %1039 = vmatpush.msra.mxu1 %v1670_v14 }
  0xf0   :  { %1041 = vmatpush.msra.mxu1 %v736_v52 }
  0xf2   :  { %1043 = vmatpush.msra.mxu1 %v738_v1 }
  0xf4   :  { %1045 = vmatpush.msra.mxu1 %v740_v37 }
 0x137   :  { %v541_v47 = vpop.f32.mrf.mxu0 }
 0x139   :  { %v580_v51 = vpop.f32.mrf.mxu1 }
 0x13b   :  { %v487_v32 = vpop.f32.mrf.mxu3 }
 0x143   :  { %v386_v20 = vpop.f32.mrf.mxu2  ;;  %v686_v0 = vpop.f32.mrf.mxu3 }
 0x144   :  { %v387_v24 = vadd.f32 %v1071_v18, %v386_v20 }
 0x146   :  { %v488_v46 = vadd.f32 %v487_v32, %v387_v24 }
 0x148   :  { %v542_v50 = vadd.f32 %v541_v47, %v488_v46 }
 0x14a   :  { %v581_v54 = vadd.f32 %v580_v51, %v542_v50 }
 0x14b   :  { %v649_v58 = vpop.f32.mrf.mxu2 }
 0x14c   :  { %v650_v63 = vadd.f32 %v649_v58, %v581_v54 }
 0x14e   :  { %v687_v8 = vadd.f32 %v686_v0, %v650_v63 }
 0x150   :  { %v689_v31 = vmax.f32 %v687_v8, 0.0 }
 0x152   :  { %v742_v11 = vand.u32 4294901760, %v689_v31 }
 0x154   :  { %v743_v33 = vsub.f32 %v689_v31, %v742_v11  ;;  %848 = vmatmul.f32.vlgmr.msrb.gmra.mxu1 %v742_v11 }
 0x156   :  { %902 = vmatmul.f32.vlgmr.msrb.gmra.mxu2 %v743_v33  ;;  %v744_v41 = vand.u32 4294901760, %v743_v33 }
 0x158   :  { %941 = vmatmul.f32.vlgmr.msrb.gmra.mxu3 %v744_v41  ;;  %v745_v12 = vsub.f32 %v743_v33, %v744_v41 }
 0x15a   :  { %v746_v42 = vand.u32 4294901760, %v745_v12 }
 0x15c   :  { %747 = vmatmul.f32.vlgmr.msrb.gmra.mxu0 %v746_v42  ;;  %1047 = vmatmul.f32.vlgmr.msra.gmra.mxu1 %v742_v11 }
 0x164   :  { %1010 = vmatmul.f32.vlgmr.msra.gmra.mxu0 %v742_v11 }
 0x1d1   :  { %v849_v25 = vpop.f32.mrf.mxu1 }
 0x1d9   :  { %v748_v34 = vpop.f32.mrf.mxu0  ;;  %v903_v35 = vpop.f32.mrf.mxu2 }
 0x1da   :  { %v749_v38 = vadd.f32 %v1072_v23, %v748_v34  ;;  %v1048_v4 = vpop.f32.mrf.mxu1 }
 0x1db   :  { %v942_v57 = vpop.f32.mrf.mxu3 }
 0x1dc   :  { %v850_v27 = vadd.f32 %v849_v25, %v749_v38 }
 0x1de   :  { %v904_v55 = vadd.f32 %v903_v35, %v850_v27 }
 0x1e0   :  { %v943_v60 = vadd.f32 %v942_v57, %v904_v55 }
 0x1e1   :  { %v1011_v61 = vpop.f32.mrf.mxu0 }
 0x1e2   :  { %v1012_v62 = vadd.f32 %v1011_v61, %v943_v60 }
 0x1e4   :  { %v1049_v7 = vadd.f32 %v1048_v4, %v1012_v62 }
 0x1e6   :  { %1052 = vst.msk [vmem:[%s1789_s9] sm:$0xff] %vm1051_vm2, %v1049_v7 }
 0x1e7   :  { %1057 = vsyncpa [#allocation3], 1 }
 0x1e8   :  { %1058 = vsyncpa [#allocation5], 1 }

</bundles_post_ra>
